<compile_context>
chip_gen: v7x
topology: tpu7x:2x2x1
jax: 0.10.0
libtpu: 0.0.40
codegen_flags: <defaults>
</compile_context>

<pallas_src>
import jax
import jax.numpy as jnp
import numpy as np
from jax.experimental import pallas as pl
from jax.experimental.pallas import tpu as pltpu

BN_EPS = 1e-5
LANES = 128


def _round_up(x, m):
    return (x + m - 1) // m * m


# ---------------------------- pass-1 kernels ----------------------------

def _conv_stats_kernel(p_ref, w_ref, stats_ref):
    """Conv tile (no bias; it cancels in train-mode BN).  Emit per-channel
    partial [sum; sum_sq] on sublanes 0/1 of an (8, c_blk) stats tile.
    Zero-padded rows/channels contribute exactly 0, so no masking is needed."""
    acc = jnp.dot(p_ref[...], w_ref[...], preferred_element_type=jnp.float32)
    stats_ref[0:1, :] = jnp.sum(acc, axis=0, keepdims=True)
    stats_ref[1:2, :] = jnp.sum(acc * acc, axis=0, keepdims=True)
    stats_ref[2:8, :] = jnp.zeros((6, acc.shape[1]), jnp.float32)


def _conv_stats_stash_kernel(p_ref, w_ref, stats_ref, conv_ref):
    """Same as above, but also stash the conv tile (in conv_ref.dtype, bf16 on
    the perf path) so pass 2 is purely elementwise (used when K_pad >= 2*C_pad)."""
    acc = jnp.dot(p_ref[...], w_ref[...], preferred_element_type=jnp.float32)
    stats_ref[0:1, :] = jnp.sum(acc, axis=0, keepdims=True)
    stats_ref[1:2, :] = jnp.sum(acc * acc, axis=0, keepdims=True)
    stats_ref[2:8, :] = jnp.zeros((6, acc.shape[1]), jnp.float32)
    conv_ref[...] = acc.astype(conv_ref.dtype)


# ---------------------------- pass-2 kernels ----------------------------

def _conv_bn_relu_kernel(p_ref, w_ref, scale_ref, shift_ref, o_ref):
    """Recompute the conv tile (cheaper than stash when K_pad < 2*C_pad),
    apply BN affine (f32) and ReLU; lane-dense store."""
    acc = jnp.dot(p_ref[...], w_ref[...], preferred_element_type=jnp.float32)
    y = jnp.maximum(acc * scale_ref[...] + shift_ref[...], 0.0)
    o_ref[...] = y.astype(o_ref.dtype)


def _bn_relu_kernel(conv_ref, scale_ref, shift_ref, o_ref):
    """Elementwise BN affine + ReLU over a stashed conv tile."""
    acc = conv_ref[...].astype(jnp.float32)
    y = jnp.maximum(acc * scale_ref[...] + shift_ref[...], 0.0)
    o_ref[...] = y.astype(o_ref.dtype)


# ------------------------------- wrapper --------------------------------

def down_forward(x_nchw, w_oihw, b=None, *, mxu_dtype=jnp.bfloat16,
                 tile_r_max=1024, stash_conv=None, out_dtype=jnp.float32):
    """Forward of Down: NCHW in, NCHW out.  Conv(k=3, s=2, p=1) -> BN(train) -> ReLU.

    The conv bias is intentionally NOT applied: with train-mode BatchNorm at
    default init (gamma=1, beta=0) a per-channel bias cancels exactly in
    (x - mean) * inv_std, so dropping it changes nothing numerically while
    saving a VPU add per element and an operand DMA.
    """
    del b  # cancels in train-mode BN (see docstring)
    N, Cin, H, W = x_nchw.shape
    Cout = w_oihw.shape[0]
    Hout = (H + 2 - 3) // 2 + 1
    Wout = (W + 2 - 3) // 2 + 1
    R = N * Hout * Wout
    K = 9 * Cin
    k_pad = _round_up(K, LANES)
    c_pad = _round_up(Cout, LANES)

    # 256-wide output-channel tiles feed the full 2x256x256 MXU on v6e/v7x when
    # Cout allows; 128-wide is already native on v5e and for small Cout.
    c_blk = 256 if (c_pad % 256 == 0) else LANES
    num_c_tiles = c_pad // c_blk

    # v7x megacore: force an even, >=2 number of row-tile grid steps so both
    # TensorCores get balanced work; grow tile_r toward tile_r_max to amortize
    # the ~0.35us per-grid-step pipeline overhead (free on v5e/v6e).
    nt = max(2, -(-R // tile_r_max))
    nt += nt % 2
    tile_r = max(8, _round_up(-(-R // nt), 8))
    num_tiles = -(-R // tile_r)
    num_tiles += num_tiles % 2
    r_pad = num_tiles * tile_r

    # Shape-aware recompute-vs-stash: stashing a bf16 conv tile costs ~4*c_pad
    # bytes/row (write+read) while re-reading bf16 patches costs 2*k_pad
    # bytes/row plus a second matmul -> stash wins when K_pad >= 2*C_pad.
    if stash_conv is None:
        stash_conv = k_pad >= 2 * c_pad

    # ---- glue: im2col into a lane-dense (r_pad, k_pad) slab, in mxu_dtype so
    # the transpose/pad/slice/concat chain moves half the HBM bytes. ----
    # TODO(synk): fold the im2col into pass 1 via manual strided DMA from the
    # padded NHWC input (memory_space=pl.ANY) so the patch slab never hits HBM.
    x_nhwc = jnp.transpose(x_nchw.astype(mxu_dtype), (0, 2, 3, 1))
    xpad = jnp.pad(x_nhwc, ((0, 0), (1, 1), (1, 1), (0, 0)))
    taps = []
    for dh in range(3):
        for dw in range(3):
            sl = xpad[:, dh:dh + 2 * Hout:2, dw:dw + 2 * Wout:2, :]  # (N,Hout,Wout,Cin)
            taps.append(sl.reshape(R, Cin))
    patches = jnp.concatenate(taps, axis=1)                           # (R, 9*Cin)
    patches = jnp.pad(patches, ((0, r_pad - R), (0, k_pad - K)))

    # OIHW -> (kh, kw, cin, cout) -> (9*Cin, Cout), matching patch column order.
    w_flat = jnp.transpose(w_oihw, (2, 3, 1, 0)).reshape(K, Cout).astype(jnp.float32)
    w_flat = jnp.pad(w_flat, ((0, k_pad - K), (0, c_pad - Cout))).astype(mxu_dtype)

    params = pltpu.CompilerParams(
        dimension_semantics=("parallel", "parallel"),
        vmem_limit_bytes=32 * 1024 * 1024)

    grid = (num_tiles, num_c_tiles)
    p_spec = pl.BlockSpec((tile_r, k_pad), lambda i, j: (i, 0))
    w_spec = pl.BlockSpec((k_pad, c_blk), lambda i, j: (0, j))
    stats_spec = pl.BlockSpec((8, c_blk), lambda i, j: (i, j))
    row_spec = pl.BlockSpec((1, c_blk), lambda i, j: (0, j))
    tile_spec = pl.BlockSpec((tile_r, c_blk), lambda i, j: (i, j))

    # ---- pass 1: conv, per-tile partial BN statistics (optionally stash conv) ----
    if stash_conv:
        stats, conv_flat = pl.pallas_call(
            _conv_stats_stash_kernel,
            out_shape=(jax.ShapeDtypeStruct((num_tiles * 8, c_pad), jnp.float32),
                       jax.ShapeDtypeStruct((r_pad, c_pad), mxu_dtype)),
            grid=grid,
            in_specs=[p_spec, w_spec],
            out_specs=(stats_spec, tile_spec),
            compiler_params=params,
        )(patches, w_flat)
    else:
        stats = pl.pallas_call(
            _conv_stats_kernel,
            out_shape=jax.ShapeDtypeStruct((num_tiles * 8, c_pad), jnp.float32),
            grid=grid,
            in_specs=[p_spec, w_spec],
            out_specs=stats_spec,
            compiler_params=params,
        )(patches, w_flat)
        conv_flat = None

    # Tiny cross-tile reduction + BN parameter computation (f32).
    stats = stats.reshape(num_tiles, 8, c_pad)
    ch_sum = jnp.sum(stats[:, 0, :], axis=0)
    ch_sumsq = jnp.sum(stats[:, 1, :], axis=0)
    mean = ch_sum / R
    # TODO(synk): E[x^2]-E[x]^2 in f32 can cancel when |mean| >> std; a shifted
    # two-pass variance would be safer for extreme activation scales.
    var = jnp.maximum(ch_sumsq / R - mean * mean, 0.0)   # biased var (PyTorch BN norm)
    inv_std = jax.lax.rsqrt(var + BN_EPS)
    scale = inv_std.reshape(1, c_pad)                    # gamma = 1 (default init)
    shift = (-mean * inv_std).reshape(1, c_pad)          # beta  = 0 (default init)

    # ---- pass 2: BN affine + ReLU (elementwise on stashed conv, or recompute) ----
    if stash_conv:
        out_flat = pl.pallas_call(
            _bn_relu_kernel,
            out_shape=jax.ShapeDtypeStruct((r_pad, c_pad), out_dtype),
            grid=grid,
            in_specs=[tile_spec, row_spec, row_spec],
            out_specs=tile_spec,
            compiler_params=params,
        )(conv_flat, scale, shift)
    else:
        out_flat = pl.pallas_call(
            _conv_bn_relu_kernel,
            out_shape=jax.ShapeDtypeStruct((r_pad, c_pad), out_dtype),
            grid=grid,
            in_specs=[p_spec, w_spec, row_spec, row_spec],
            out_specs=tile_spec,
            compiler_params=params,
        )(patches, w_flat, scale, shift)

    out = out_flat[:R, :Cout].reshape(N, Hout, Wout, Cout)
    # Keep the module's NCHW output contract (f32).  Downstream users that can
    # consume NHWC/bf16 should skip this transpose and pass out_dtype=bf16.
    return jnp.transpose(out, (0, 3, 1, 2))


def down_reference(x_nchw, w_oihw, b):
    """Pure-JAX reference matching PyTorch Down.forward (train-mode BN, f32)."""
    out = jax.lax.conv_general_dilated(
        x_nchw.astype(jnp.float32), w_oihw.astype(jnp.float32),
        window_strides=(2, 2), padding=((1, 1), (1, 1)),
        dimension_numbers=("NCHW", "OIHW", "NCHW"))
    out = out + b[None, :, None, None]
    mean = out.mean(axis=(0, 2, 3), keepdims=True)
    var = out.var(axis=(0, 2, 3), keepdims=True)  # biased, like PyTorch BN normalization
    return jnp.maximum((out - mean) / jnp.sqrt(var + BN_EPS), 0.0)


if __name__ == "__main__":
    # Small shapes: batch=2, in_channels=4, out_channels=8, spatial=16x16
    N, Cin, Cout, H, W = 2, 4, 8, 16, 16

    key = jax.random.PRNGKey(0)
    kx, kw, kb = jax.random.split(key, 3)

    x = jax.random.normal(kx, (N, Cin, H, W), dtype=jnp.float32)

    # Deterministic parameter init (Conv2d-style uniform fan-in bound).
    fan_in = Cin * 3 * 3
    bound = 1.0 / np.sqrt(fan_in)
    w = jax.random.uniform(kw, (Cout, Cin, 3, 3), minval=-bound, maxval=bound,
                           dtype=jnp.float32)
    b = jax.random.uniform(kb, (Cout,), minval=-bound, maxval=bound,
                           dtype=jnp.float32)
    # BatchNorm2d params at default init (gamma=1, beta=0) are folded into the kernel;
    # the conv bias cancels in train-mode BN and is dropped inside down_forward.

    ref = jax.block_until_ready(down_reference(x, w, b))

    # f32-operand path: tight check against the full-precision reference
    # (exercises the recompute pass-2 variant auto-selected for this shape).
    out_f32 = jax.block_until_ready(down_forward(x, w, b, mxu_dtype=jnp.float32))
    assert out_f32.shape == (N, Cout, H // 2, W // 2), out_f32.shape
    np.testing.assert_allclose(np.asarray(out_f32), np.asarray(ref), rtol=1e-4, atol=1e-4)

    # Default bf16 MXU-operand path (perf config): bf16 operands, f32 accumulate/BN.
    out_bf16 = jax.block_until_ready(down_forward(x, w, b))
    assert out_bf16.shape == (N, Cout, H // 2, W // 2), out_bf16.shape
    np.testing.assert_allclose(np.asarray(out_bf16), np.asarray(ref), rtol=2e-2, atol=2e-2)

    # Forced-stash variant (the path auto-selected when K_pad >= 2*C_pad,
    # e.g. realistic Cin with Cout <= 128): validates both stash kernels on TPU.
    out_stash = jax.block_until_ready(down_forward(x, w, b, stash_conv=True))
    np.testing.assert_allclose(np.asarray(out_stash), np.asarray(ref), rtol=2e-2, atol=2e-2)

    print("KERNEL_OK")
</pallas_src>

<mosaic_0001>
module attributes {stable_mosaic.version = 11 : i64} {
  func.func @_conv_stats_kernel(%arg0: i32, %arg1: i32, %arg2: memref<64x128xf32, #tpu.memory_space<vmem>>, %arg3: memref<128x128xf32, #tpu.memory_space<vmem>>, %arg4: memref<8x128xf32, #tpu.memory_space<vmem>>) attributes {dimension_semantics = [#tpu.dimension_semantics<parallel>, #tpu.dimension_semantics<parallel>], iteration_bounds = array<i64: 2, 1>, scalar_prefetch = 0 : i64, scratch_operands = 0 : i64, tpu.core_type = #tpu.core_type<tc>, window_params = [{transform_indices = @transform_0, window_bounds = array<i64: 64, 128>}, {transform_indices = @transform_1, window_bounds = array<i64: 128, 128>}, {transform_indices = @transform_2, window_bounds = array<i64: 8, 128>}]} {
    %c0 = arith.constant 0 : index
    %c0_0 = arith.constant 0 : index
    %0 = vector.load %arg2[%c0, %c0_0] : memref<64x128xf32, #tpu.memory_space<vmem>>, vector<64x128xf32>
    %c0_1 = arith.constant 0 : index
    %c0_2 = arith.constant 0 : index
    %1 = vector.load %arg3[%c0_1, %c0_2] : memref<128x128xf32, #tpu.memory_space<vmem>>, vector<128x128xf32>
    %cst = arith.constant dense<0.000000e+00> : vector<64x128xf32>
    %2 = tpu.matmul %0, %1, %cst {dimension_numbers = #tpu.dot_dimension_numbers<[1], [0], [0], [1], [0, 0, 1, 1], [], []>} : vector<64x128xf32>, vector<128x128xf32>, vector<64x128xf32> -> vector<64x128xf32>
    %cst_3 = arith.constant dense<0.000000e+00> : vector<128xf32>
    %3 = vector.multi_reduction <add>, %2, %cst_3 [0] : vector<64x128xf32> to vector<128xf32>
    %4 = vector.shape_cast %3 : vector<128xf32> to vector<1x128xf32>
    %c0_4 = arith.constant 0 : index
    %c0_5 = arith.constant 0 : index
    %5 = vector.load %arg4[%c0_4, %c0_5] : memref<8x128xf32, #tpu.memory_space<vmem>>, vector<1x128xf32>
    tpu.vector_store %arg4[%c0_4, %c0_5], %4 {strides = array<i32>} : memref<8x128xf32, #tpu.memory_space<vmem>>, vector<1x128xf32>,
    %6 = arith.mulf %2, %2 : vector<64x128xf32>
    %cst_6 = arith.constant dense<0.000000e+00> : vector<128xf32>
    %7 = vector.multi_reduction <add>, %6, %cst_6 [0] : vector<64x128xf32> to vector<128xf32>
    %8 = vector.shape_cast %7 : vector<128xf32> to vector<1x128xf32>
    %c1 = arith.constant 1 : index
    %c0_7 = arith.constant 0 : index
    %9 = vector.load %arg4[%c1, %c0_7] : memref<8x128xf32, #tpu.memory_space<vmem>>, vector<1x128xf32>
    tpu.vector_store %arg4[%c1, %c0_7], %8 {strides = array<i32>} : memref<8x128xf32, #tpu.memory_space<vmem>>, vector<1x128xf32>,
    %cst_8 = arith.constant 0.000000e+00 : f32
    %10 = vector.broadcast %cst_8 : f32 to vector<6x128xf32>
    %c2 = arith.constant 2 : index
    %c0_9 = arith.constant 0 : index
    %11 = vector.load %arg4[%c2, %c0_9] : memref<8x128xf32, #tpu.memory_space<vmem>>, vector<6x128xf32>
    tpu.vector_store %arg4[%c2, %c0_9], %10 {strides = array<i32>} : memref<8x128xf32, #tpu.memory_space<vmem>>, vector<6x128xf32>,
    return
  }
  func.func @transform_0(%arg0: i32, %arg1: i32) -> (i32, i32) {
    %c0_i32 = arith.constant 0 : i32
    %c0_i32_0 = arith.constant 0 : i32
    return %arg0, %c0_i32 : i32, i32
  }
  func.func @transform_1(%arg0: i32, %arg1: i32) -> (i32, i32) {
    %c0_i32 = arith.constant 0 : i32
    %c0_i32_0 = arith.constant 0 : i32
    return %c0_i32, %arg1 : i32, i32
  }
  func.func @transform_2(%arg0: i32, %arg1: i32) -> (i32, i32) {
    %c0_i32 = arith.constant 0 : i32
    return %arg0, %arg1 : i32, i32
  }
}

</mosaic_0001>

<bundles_post_ra>
// kernel: tpu_custom_call.1
= control target key start
LH: loop header
LB: loop body
LE: loop exit
PB: predicated region body
PF: predicated region fallthrough
CT: control target
= control target key end

     0   :  { %7 = vsyncpa [#allocation3], 0  ;;  %s1087_s0 = inlined_call_operand.hbm [shape: f32[128,128], index: 0, kind: input, shape index: {}]   ;;  %s1088_s1 = inlined_call_operand.hbm [shape: f32[128,128], index: 1, kind: input, shape index: {}]   ;;  %s1089_s2 = inlined_call_operand.hbm [shape: f32[16,128], index: 2, kind: output, shape index: {}]  }
   0x1   :  { %9 = vsyncpa [#allocation3 + $0x1], 0 }
   0x2   :  { %10 = vsyncpa [#allocation6], 0 }
   0x3   :  { %11 = vsyncpa [#allocation4], 0 }
   0x4   :  { %13 = vsyncpa [#allocation4 + $0x1], 0  ;;  %s847_s9 = smov 0   ;;  %s849_s10 = smov 0  }
   0x5   :  { %s851_s11 = smov 0   ;;  %s853_s12 = smov 0  }
   0x6   :  { %s855_s13 = smov 0   ;;  %s857_s14 = smov 0  }
   0x7 LB: > { %s471_s15 = sadd.s32 4294967295, %s824_s14   ;;  %s472_s16 = sadd.s32 4294967294, %s824_s14   ;;  %s824_s14 = sphi %s857_s14, %s19_s14   ;;  %s820_s13 = sphi %s855_s13, %s1113_s13   ;;  %s816_s12 = sphi %s853_s12, %s1112_s12   ;;  %s812_s11 = sphi %s851_s11, %s1111_s11   ;;  %s808_s10 = sphi %s849_s10, %s1110_s10   ;;  %s804_s9 = sphi %s847_s9, %s1109_s9  }
   0x8   : > { %p51_p0 = scmp.ne.s32.totalorder %s808_s10, %s804_s9  ;;  %p881_p1 = scmp.eq.s32.totalorder %s471_s15, 0 }
   0x9   : > { %p885_p2 = scmp.eq.s32.totalorder %s471_s15, 1  ;;  %p109_p3 = scmp.eq.s32.totalorder %s472_s16, 1 }
   0xa   : > { %s1094_s17 = scalar_select %p881_p1, 1, 0 }
   0xb   : > { %s1095_s18 = scalar_select %p885_p2, 1, 0 }
   0xc   : > { %p891_p4 = por %p881_p1, %p51_p0  ;;  %p473_p5 = scmp.ge.s32.totalorder %s824_s14, 1 }
   0xd   : > { %p896_p6 = por %p109_p3, %p51_p0  ;;  %p116_p7 = scmp.lt.s32.totalorder %s824_s14, 3 }
   0xe   : > { %s1096_s19 = scalar_select %p891_p4, 1, 0 }
   0xf   : > { %s1097_s20 = scalar_select %p896_p6, 1, 0 }
  0x10   : > { %p901_p8 = pnand %p473_p5, %p116_p7  ;;  %s826_s22 = smov [#allocation5]  }
  0x11   : > { %s130_s23 = sshll.u32 %s826_s22, 4  ;;  %s31_s25 = sadd.s32 1, %s820_s13  ;;  %s131_s23 = int_to_ptr.vmem [resolvable:$true] %s130_s23 }
  0x12   : > { %s1098_s21 = scalar_select %p901_p8, 1, 0 }
  0x13   : > { %p612_p9 = pneg %p901_p8  ;;  %s680_s28 = scalar_lea.hbm %s1088_s1, 2048 }
  0x14   : > { %p681_p12 = scmp.ne.s32.totalorder %s1088_s1, %s680_s28  ;;  %p687_p5 = scmp.lt.u32.totalorder %s680_s28, %s1088_s1 }
  0x15   : > { %p910_p11 = pnand %p612_p9, %p881_p1 }
  0x17   : > { %p682_p13 = pneg %p910_p11 }
  0x19   : > { %p683_p0 = pnand %p682_p13, %p681_p12 }
  0x1b   : > { %p684_p3 = pneg %p683_p0 }
  0x1d   : > { %p689_p7 = pnand %p687_p5, %p684_p3 }
  0x1f   : > { %692 = shalt.err (!%p689_p7)
}
  0x20   : > { %s693_s5 = scalar_lea.vmem %s131_s23, 2048  ;;  %p701_p1 = scmp.lt.s32.totalorder %s131_s23, %s131_s23 }
  0x21   : > { %p694_p9 = scmp.ne.s32.totalorder %s131_s23, %s693_s5  ;;  %p702_p4 = scmp.lt.s32.totalorder %s693_s5, %s693_s5 }
  0x23   : > { %p696_p10 = pnand %p694_p9, %p682_p13  ;;  %p703_p8 = por %p702_p4, %p701_p1 }
  0x25   : > { %p697_p6 = pneg %p696_p10 }
  0x27   : > { %p704_p2 = pnand %p703_p8, %p697_p6 }
  0x29   : > { %707 = shalt.err (!%p704_p2)
}
  0x2a   : > { %s827_s6 = smov 128   ;;  %s828_s7 = smov 8  }
  0x2b   : > { %615 = dma.hbm_to_vmem [thread:$0]  (!%p910_p11), %s1088_s1, 2048, %s131_s23, [#allocation6], %s827_s6, %s827_s6, %s828_s7  }
  0x2c   : > { %p33_p1 = scmp.ge.s32.totalorder %s31_s25, 2  ;;  %s38_s16 = sadd.s32 1, %s812_s11 }
  0x2d   : > { %p45_p2 = scmp.ne.s32.totalorder %s812_s11, %s808_s10  ;;  %p46_p4 = scmp.eq.s32.totalorder %s824_s14, 0 }
  0x2e   : > { %s1115_s25 = smov (%p33_p1, %s31_s25), 0  ;;  %p1101_p8 = scmp.ne.s32.totalorder %s1095_s18, 0 }
  0x2f   : > { %p940_p6 = por %p46_p4, %p45_p2  ;;  %s35_s26 = ssub.s32 %s820_s13, %s1115_s25 }
  0x30   : > { %p946_p10 = por %p1101_p8, %p45_p2  ;;  %p625_p12 = scmp.lt.s32.totalorder %s824_s14, 2 }
  0x31   : > { %p36_p11 = scmp.eq.s32.totalorder %s35_s26, 0  ;;  %s144_s23 = sand.u32 1, %s812_s11  }
  0x32   : > { %s476_s27 = sshll.u32 %s144_s23, 6  ;;  %s487_s29 = sshll.u32 %s820_s13, 10 }
  0x33   : > { %s955_s28 = scalar_select %p36_p11, %s812_s11, %s38_s16  }
  0x34   : > { %s961_s4 = scalar_lea.hbm %s1087_s0, %s487_s29  ;;  %s148_s18 = scalar_lea.vmem [#allocation2], %s476_s27 }
  0x35   : > { %s155_s5 = sshll.u32 %s148_s18, 4  ;;  %p967_p13 = pnand %p625_p12, %p940_p6  ;;  %s963_s5 = int_to_ptr.vmem [resolvable:$true] %s155_s5 }
  0x36   : > { %s971_s15 = scalar_lea.sflag [#allocation3], %s144_s23  ;;  %s708_s16 = scalar_lea.hbm %s961_s4, 1024 }
  0x37   : > { %p709_p0 = scmp.ne.s32.totalorder %s961_s4, %s708_s16  ;;  %p710_p3 = pneg %p967_p13 }
  0x38   : > { %s713_s22 = scalar_lea.hbm %s1087_s0, 2048  ;;  %p714_p9 = scmp.lt.u32.totalorder %s961_s4, %s1087_s0 }
  0x39   : > { %p711_p5 = pnand %p710_p3, %p709_p0  ;;  %p715_p1 = scmp.lt.u32.totalorder %s713_s22, %s708_s16 }
  0x3a   : > { %p717_p4 = scmp.lt.u32.totalorder %s708_s16, %s961_s4 }
  0x3b   : > { %p712_p7 = pneg %p711_p5  ;;  %p716_p2 = por %p715_p1, %p714_p9 }
  0x3d   : > { %p718_p6 = por %p717_p4, %p716_p2 }
  0x3f   : > { %p719_p8 = pnand %p718_p6, %p712_p7 }
  0x41   : > { %722 = shalt.err (!%p719_p8)
}
  0x42   : > { %s723_s23 = scalar_lea.vmem %s963_s5, 1024  ;;  %s829_s3 = smov [#allocation2]  }
  0x43   : > { %p724_p12 = scmp.ne.s32.totalorder %s963_s5, %s723_s23  ;;  %s728_s18 = sshll.u32 %s829_s3, 4  ;;  %s729_s18 = int_to_ptr.vmem [resolvable:$false] %s728_s18 }
  0x44   : > { %s730_s26 = scalar_lea.vmem %s729_s18, 2048  ;;  %p731_p5 = scmp.lt.s32.totalorder %s963_s5, %s729_s18 }
  0x45   : > { %p726_p11 = pnand %p724_p12, %p710_p3  ;;  %p732_p9 = scmp.lt.s32.totalorder %s730_s26, %s723_s23 }
  0x47   : > { %p727_p0 = pneg %p726_p11  ;;  %p733_p1 = por %p732_p9, %p731_p5 }
  0x49   : > { %p734_p2 = pnand %p733_p1, %p727_p0 }
  0x4b   : > { %737 = shalt.err (!%p734_p2)
}
  0x4c   : > { %619 = dma.hbm_to_vmem [thread:$0]  (!%p967_p13), %s961_s4, 1024, %s963_s5, %s971_s15, %s827_s6, %s827_s6, %s828_s7  }
  0x4d   : > { %p1104_p3 = scmp.ne.s32.totalorder %s1098_s21, 0 }
  0x4e   : > { %s1005_s16 = sand.u32 (!%p1104_p3), 1, %s808_s10   ;;  %p1105_p7 = scmp.ne.s32.totalorder (!%p1104_p3), %s1096_s19, 0 }
  0x4f   : > { %167 = sbr.rel (%p1104_p3) target bundleno = 382 (0x17e), region = 28  ;;  %s480_s27 = sshll.u32 (!%p1104_p3), %s1005_s16, 6 }
  0x50   : > { %s170_s22 = scalar_lea.sflag (!%p1104_p3), [#allocation3], %s1005_s16  ;;  %s1009_s29 = scalar_lea.vmem (!%p1104_p3), [#allocation2], %s480_s27 }
  0x56   : > { %791 = dma.done.wait (%p1105_p7), %s170_s22, 1024  }
  0x57   : > { %793 = vsyncadd (%p1105_p7), %s170_s22, 4294966272  ;;  %p1106_p13 = scmp.ne.s32.totalorder %s1094_s17, 0 }
  0x59   : > { %795 = dma.done.wait (%p1106_p13), [#allocation6], 2048  }
  0x5a   : > { %797 = vsyncadd (%p1106_p13), [#allocation6], 4294965248  ;;  %v207_v0 = vld [vmem:[#allocation5] sm:$0xff]  ;;  %v208_v1 = vld [vmem:[#allocation5 + $0x8] sm:$0xff]  ;;  %s482_s17 = sshll.u32 %s1005_s16, 3  ;;  %v830_v32 = vmov 0.0  }
  0x5b   : > { %v209_v2 = vld [vmem:[#allocation5 + $0x10] sm:$0xff]  ;;  %v556_v3 = vpack.c.bf16 %v208_v1, %v207_v0  ;;  %v210_v4 = vld [vmem:[#allocation5 + $0x18] sm:$0xff]  ;;  %v211_v6 = vld [vmem:[#allocation5 + $0x20] sm:$0xff]  ;;  %s1028_s19 = scalar_lea.vmem [#allocation7], %s482_s17  ;;  %s484_s21 = sshll.u32 %s816_s12, 7 }
  0x5c   : > { %v560_v5 = vpack.c.bf16 %v210_v4, %v209_v2  ;;  %v212_v7 = vld [vmem:[#allocation5 + $0x28] sm:$0xff]  ;;  %v199_v9 = vld [vmem:[%s1009_s29] sm:$0xff]  ;;  %v213_v10 = vld [vmem:[#allocation5 + $0x30] sm:$0xff]  ;;  %364 = vst [vmem:[%s1028_s19 + $0x2] sm:$0x3f] %v830_v32  ;;  %s380_s6 = sshll.u32 %s1028_s19, 4  ;;  %s1037_s5 = scalar_lea.hbm %s1089_s2, %s484_s21  ;;  %s1039_s6 = int_to_ptr.vmem [resolvable:$true] %s380_s6 }
  0x5d   : > { %557 = vmatprep.subr.bf16.mxu0 %v556_v3  ;;  %588 = vmatprep.subr.bf16.mxu1 %v556_v3  ;;  %v564_v8 = vpack.c.bf16 %v212_v7, %v211_v6  ;;  %v214_v11 = vld [vmem:[#allocation5 + $0x38] sm:$0xff]  ;;  %v203_v12 = vld [vmem:[%s1009_s29 + $0x20] sm:$0xff]  ;;  %v216_v15 = vld [vmem:[#allocation5 + $0x48] sm:$0xff]  ;;  %s366_s8 = scalar_lea.sflag [#allocation4], %s1005_s16  ;;  %s738_s15 = scalar_lea.vmem %s1039_s6, 128 }
  0x5e   : > { %559 = vmatpush3.bf16.msra.mxu0 %v556_v3  ;;  %596 = vmatpush3.bf16.msra.mxu1 %v556_v3  ;;  %v568_v13 = vpack.c.bf16 %v214_v11, %v213_v10  ;;  %v215_v14 = vld [vmem:[#allocation5 + $0x40] sm:$0xff]  ;;  %v217_v17 = vld [vmem:[#allocation5 + $0x50] sm:$0xff]  ;;  %v218_v18 = vld [vmem:[#allocation5 + $0x58] sm:$0xff]  ;;  %p739_p4 = scmp.ne.s32.totalorder %s1039_s6, %s738_s15  ;;  %s831_s12 = smov [#allocation7]  }
  0x5f   : > { %561 = vmatprep.subr.bf16.mxu0 %v560_v5  ;;  %589 = vmatprep.subr.bf16.mxu1 %v560_v5  ;;  %v572_v16 = vpack.c.bf16 %v216_v15, %v215_v14  ;;  %v576_v19 = vpack.c.bf16 %v218_v18, %v217_v17  ;;  %v219_v20 = vld [vmem:[#allocation5 + $0x60] sm:$0xff]  ;;  %v220_v21 = vld [vmem:[#allocation5 + $0x68] sm:$0xff]  ;;  %v221_v23 = vld [vmem:[#allocation5 + $0x70] sm:$0xff]  ;;  %s742_s30 = sshll.u32 %s831_s12, 4  ;;  %s743_s30 = int_to_ptr.vmem [resolvable:$false] %s742_s30 }
  0x60   : > { %544 = vmatprep.mubr.f32.mxu0 %v199_v9  ;;  %550 = vmatprep.mubr.f32.mxu1 %v203_v12  ;;  %v580_v22 = vpack.c.bf16 %v220_v21, %v219_v20  ;;  %v222_v24 = vld [vmem:[#allocation5 + $0x78] sm:$0xff]  ;;  %v200_v26 = vld [vmem:[%s1009_s29 + $0x8] sm:$0xff]  ;;  %v201_v28 = vld [vmem:[%s1009_s29 + $0x10] sm:$0xff]  ;;  %p740_p6 = pnand %p739_p4, %p946_p10  ;;  %s744_s23 = scalar_lea.vmem %s743_s30, 256 }
  0x61   : > { %v584_v25 = vpack.c.bf16 %v222_v24, %v221_v23  ;;  %v204_v27 = vld [vmem:[%s1009_s29 + $0x28] sm:$0xff]  ;;  %v205_v29 = vld [vmem:[%s1009_s29 + $0x30] sm:$0xff]  ;;  %v202_v30 = vld [vmem:[%s1009_s29 + $0x18] sm:$0xff]  ;;  %p745_p12 = scmp.lt.s32.totalorder %s1039_s6, %s743_s30  ;;  %p746_p11 = scmp.lt.s32.totalorder %s744_s23, %s738_s15 }
  0x62   : > { %563 = vmatpush3.bf16.msra.mxu0 %v560_v5  ;;  %597 = vmatpush3.bf16.msra.mxu1 %v560_v5  ;;  %v206_v31 = vld [vmem:[%s1009_s29 + $0x38] sm:$0xff]  ;;  %p741_p8 = pneg %p740_p6 }
  0x63   : > { %565 = vmatprep.subr.bf16.mxu0 %v564_v8  ;;  %590 = vmatprep.subr.bf16.mxu1 %v564_v8  ;;  %p747_p0 = por %p746_p11, %p745_p12 }
  0x65   : > { %p748_p5 = pnand %p747_p0, %p741_p8 }
  0x66   : > { %567 = vmatpush3.bf16.msra.mxu0 %v564_v8  ;;  %598 = vmatpush3.bf16.msra.mxu1 %v564_v8 }
  0x67   : > { %569 = vmatprep.subr.bf16.mxu0 %v568_v13  ;;  %591 = vmatprep.subr.bf16.mxu1 %v568_v13 }
  0x6a   : > { %571 = vmatpush3.bf16.msra.mxu0 %v568_v13  ;;  %599 = vmatpush3.bf16.msra.mxu1 %v568_v13 }
  0x6b   : > { %573 = vmatprep.subr.bf16.mxu0 %v572_v16  ;;  %592 = vmatprep.subr.bf16.mxu1 %v572_v16 }
  0x6e   : > { %575 = vmatpush3.bf16.msra.mxu0 %v572_v16  ;;  %600 = vmatpush3.bf16.msra.mxu1 %v572_v16 }
  0x6f   : > { %577 = vmatprep.subr.bf16.mxu0 %v576_v19  ;;  %593 = vmatprep.subr.bf16.mxu1 %v576_v19 }
  0x72   : > { %579 = vmatpush3.bf16.msra.mxu0 %v576_v19  ;;  %601 = vmatpush3.bf16.msra.mxu1 %v576_v19 }
  0x73   : > { %581 = vmatprep.subr.bf16.mxu0 %v580_v22  ;;  %594 = vmatprep.subr.bf16.mxu1 %v580_v22 }
  0x76   : > { %583 = vmatpush3.bf16.msra.mxu0 %v580_v22  ;;  %602 = vmatpush3.bf16.msra.mxu1 %v580_v22 }
  0x77   : > { %585 = vmatprep.subr.bf16.mxu0 %v584_v25  ;;  %595 = vmatprep.subr.bf16.mxu1 %v584_v25 }
  0x7a   : > { %587 = vmatpush3.bf16.msra.mxu0 %v584_v25  ;;  %603 = vmatpush3.bf16.msra.mxu1 %v584_v25 }
  0x7d   : > { %545 = vmatmul.mubr.f32.vlgmr.msra.gmra.mrb[0].mxu0 %v200_v26  ;;  %551 = vmatmul.mubr.f32.vlgmr.msra.gmra.mrb[0].mxu1 %v204_v27 }
  0x7e   : > { %547 = vmatprep.mubr.f32.mxu0 %v201_v28  ;;  %553 = vmatprep.mubr.f32.mxu1 %v205_v29 }
  0x81   : > { %548 = vmatmul.mubr.f32.gmra.mrb[2].mxu0 %v202_v30  ;;  %554 = vmatmul.mubr.f32.gmra.mrb[2].mxu1 %v206_v31 }
 0x150   : > { %v546_v33 = vpop.f32.mrb[0].mxu0  ;;  %v552_v34 = vpop.f32.mrb[0].mxu1 }
 0x151   : > { %v343_v35 = vmul.f32 %v546_v33, %v546_v33  ;;  %v289_v36 = vpop.f32.mrb[1].mxu0  ;;  %v309_v37 = vpop.f32.mrb[1].mxu1  ;;  %v347_v53 = vmul.f32 %v552_v34, %v552_v34 }
 0x152   : > { %v328_v38 = vadd.f32 %v546_v33, %v289_v36  ;;  %v342_v39 = vmul.f32 %v289_v36, %v289_v36  ;;  %v346_v50 = vmul.f32 %v309_v37, %v309_v37 }
 0x154   : > { %v350_v40 = vadd.f32 %v343_v35, %v342_v39  ;;  %v549_v41 = vpop.f32.mrb[2].mxu0  ;;  %v555_v42 = vpop.f32.mrb[2].mxu1 }
 0x155   : > { %v299_v43 = vpop.f32.mrb[3].mxu0  ;;  %v319_v44 = vpop.f32.mrb[3].mxu1  ;;  %v345_v47 = vmul.f32 %v549_v41, %v549_v41  ;;  %v349_v59 = vmul.f32 %v555_v42, %v555_v42 }
 0x156   : > { %v329_v45 = vadd.f32 %v328_v38, %v299_v43  ;;  %v344_v46 = vmul.f32 %v299_v43, %v299_v43  ;;  %v348_v56 = vmul.f32 %v319_v44, %v319_v44 }
 0x158   : > { %v330_v48 = vadd.f32 %v549_v41, %v329_v45  ;;  %v351_v49 = vadd.f32 %v350_v40, %v344_v46 }
 0x15a   : > { %v352_v51 = vadd.f32 %v351_v49, %v345_v47  ;;  %v331_v52 = vadd.f32 %v330_v48, %v309_v37 }
 0x15c   : > { %v353_v54 = vadd.f32 %v352_v51, %v346_v50  ;;  %v332_v55 = vadd.f32 %v552_v34, %v331_v52 }
 0x15e   : > { %v333_v57 = vadd.f32 %v332_v55, %v319_v44  ;;  %v354_v58 = vadd.f32 %v353_v54, %v347_v53 }
 0x160   : > { %v334_v60 = vadd.f32 %v555_v42, %v333_v57  ;;  %v355_v61 = vadd.f32 %v354_v58, %v348_v56 }
 0x162   : > { %v335_v62 = vrot.slane %v334_v60, 4  ;;  %v356_v63 = vadd.f32 %v355_v61, %v349_v59 }
 0x164   : > { %v336_v0 = vadd.f32 %v335_v62, %v334_v60  ;;  %v357_v1 = vrot.slane %v356_v63, 4 }
 0x166   : > { %v337_v2 = vrot.slane %v336_v0, 2  ;;  %v358_v3 = vadd.f32 %v357_v1, %v356_v63 }
 0x168   : > { %v338_v4 = vadd.f32 %v337_v2, %v336_v0  ;;  %v359_v5 = vrot.slane %v358_v3, 2 }
 0x16a   : > { %v339_v6 = vrot.slane %v338_v4, 1  ;;  %v360_v7 = vadd.f32 %v359_v5, %v358_v3 }
 0x16c   : > { %v340_v8 = vadd.f32 %v339_v6, %v338_v4  ;;  %v361_v9 = vrot.slane %v360_v7, 1 }
 0x16e   : > { %v362_v10 = vadd.f32 %v361_v9, %v360_v7  ;;  %341 = vst [vmem:[%s1028_s19] sm:$0x1] %v340_v8 }
 0x170   : > { %363 = vst [vmem:[%s1028_s19 + $0x1] sm:$0x1] %v362_v10 }
 0x171   : > { %751 = shalt.err (!%p748_p5)
}
 0x172   : > { %s752_s3 = scalar_lea.hbm %s1037_s5, 128  ;;  %s756_s16 = scalar_lea.hbm %s1089_s2, 256 }
 0x173   : > { %p753_p9 = scmp.ne.s32.totalorder %s1037_s5, %s752_s3  ;;  %p757_p3 = scmp.lt.u32.totalorder %s1037_s5, %s1089_s2 }
 0x174   : > { %p758_p7 = scmp.lt.u32.totalorder %s756_s16, %s752_s3  ;;  %p760_p4 = scmp.lt.u32.totalorder %s752_s3, %s1037_s5 }
 0x175   : > { %p754_p1 = pnand %p753_p9, %p946_p10 }
 0x176   : > { %p759_p13 = por %p758_p7, %p757_p3 }
 0x177   : > { %p755_p2 = pneg %p754_p1 }
 0x178   : > { %p761_p6 = por %p760_p4, %p759_p13 }
 0x17a   : > { %p762_p8 = pnand %p761_p6, %p755_p2 }
 0x17c   : > { %765 = shalt.err (!%p762_p8)
}
 0x17d   : > { %610 = dma.vmem_to_hbm [thread:$0]  (%p946_p10), %s1039_s6, 128, %s1037_s5, %s366_s8  }
 0x17e PF: > { %s392_s29 = sand.u32 1, %s804_s9   ;;  %p1107_p12 = scmp.ne.s32.totalorder %s1097_s20, 0 }
 0x17f   : > { %p1108_p11 = scmp.ge.s32.totalorder %s824_s14, 2  ;;  %s393_s17 = scalar_lea.sflag [#allocation4], %s392_s29 }
 0x181   : > { %p621_p0 = pnand %p1108_p11, %p1107_p12 }
 0x183   : > { %799 = dma.done.wait (!%p621_p0), %s393_s17, 128  }
 0x184   : > { %801 = vsyncadd (!%p621_p0), %s393_s17, 4294967168  ;;  %s19_s14 = sadd.s32 1, %s824_s14   ;;  %s1109_s9 = smov %s808_s10 }
 0x185   : > { %p16_p5 = scmp.ge.s32.totalorder %s19_s14, 4   ;;  %s1110_s10 = smov %s812_s11 }
 0x186   : > { %s1111_s11 = smov %s955_s28  ;;  %s1112_s12 = smov %s820_s13 }
 0x187   : > { %s1113_s13 = smov %s1115_s25  ;;  %18 = sbr.rel (!%p16_p5) target bundleno = 7 (0x7), region = 78 }
 0x18e   :  { %398 = vsyncpa [#allocation3], 1 }
 0x18f   :  { %400 = vsyncpa [#allocation3 + $0x1], 1 }
 0x190   :  { %401 = vsyncpa [#allocation6], 1 }
 0x191   :  { %402 = vsyncpa [#allocation4], 1 }
 0x192   :  { %404 = vsyncpa [#allocation4 + $0x1], 1 }

</bundles_post_ra>
